<compile_context>
chip_gen: v7x
topology: tpu7x:2x2x1
jax: 0.10.0
libtpu: 0.0.40
codegen_flags: <defaults>
</compile_context>

<pallas_src>
import jax
import jax.numpy as jnp
from jax.experimental import pallas as pl
from jax.experimental.pallas import tpu as pltpu

LANE = 128               # TPU lane width
PAIR = 2 * LANE          # 256: one row of the interleaved view = 128 samples
TILE_S_CAP = 4096        # rows per grid step -> 4 MiB in + 2 MiB out per block


def _round_up(a, m):
    return (a + m - 1) // m * m


def linear_relu_kernel(xi_ref, p_ref, b_ref, o_ref):
    # xi_ref: (tile_s, 256) VMEM, interleaved samples [x0, x1, x0, x1, ...]
    # p_ref : (256, 128) VMEM, block-diagonal fold of the (1,2) weight
    #         (P[2j, j] = w0, P[2j+1, j] = w1) -- resident across all steps
    # b_ref : (1,) SMEM bias scalar
    # o_ref : (tile_s, 128) VMEM, sample (row*128 + lane) -> o_ref[row, lane]
    #
    # The MXU does the de-interleave + K=2 dot in one shot on fully dense tiles;
    # HIGHEST precision keeps the f32 result bit-comparable to the VPU formula.
    y = jnp.dot(xi_ref[...], p_ref[...],
                preferred_element_type=jnp.float32,
                precision=jax.lax.Precision.HIGHEST)
    o_ref[...] = jnp.maximum(y + b_ref[0], 0.0).astype(o_ref.dtype)


@jax.jit
def simple_model_with_relu(x, weight, bias):
    """x: (N, 2) f32, weight: (1, 2) f32 (PyTorch layout), bias: (1,) f32 -> (N, 1) f32."""
    n, in_f = x.shape
    assert in_f == 2, "SimpleModelWithRelu expects 2 input features"

    w2 = weight.reshape(2, 1).astype(jnp.float32)        # [[w0], [w1]]
    b = bias.reshape(1).astype(jnp.float32)
    # Folded "de-interleave + linear" matrix: P[2j, j] = w0, P[2j+1, j] = w1.
    p = jnp.kron(jnp.eye(LANE, dtype=jnp.float32), w2)   # (256, 128), 128 KiB

    # Rows of the interleaved (s, 256) view; each row carries 128 samples,
    # dense in both sublanes and lanes. Round rows up to a sublane multiple.
    s = _round_up(pl.cdiv(n, LANE), 8)
    if s >= 16:
        # At least 2 grid steps (v7x megacore), capped so each step moves a few
        # MiB (amortizes per-step overhead) and VMEM stays ~12 MiB.
        tile_s = min(TILE_S_CAP, _round_up(pl.cdiv(s, 2), 8))
    else:
        tile_s = s                      # block == full dim for tiny inputs
    grid = pl.cdiv(s, tile_s)           # ragged last block is masked by Pallas

    x_flat = x.astype(jnp.float32).reshape(-1)
    flat_len = s * PAIR
    if flat_len != x_flat.shape[0]:
        # Only pay a pad copy when N isn't already 128*8-sample aligned.
        x_flat = jnp.pad(x_flat, (0, flat_len - x_flat.shape[0]))
    xi = x_flat.reshape(s, PAIR)        # free reshape of contiguous data

    out = pl.pallas_call(
        linear_relu_kernel,
        out_shape=jax.ShapeDtypeStruct((s, LANE), jnp.float32),
        grid=(grid,),
        in_specs=[
            pl.BlockSpec((tile_s, PAIR), lambda i: (i, 0)),       # interleaved x
            pl.BlockSpec((PAIR, LANE), lambda i: (0, 0)),         # folded weight
            pl.BlockSpec(memory_space=pltpu.MemorySpace.SMEM),    # bias scalar
        ],
        out_specs=pl.BlockSpec((tile_s, LANE), lambda i: (i, 0)),  # dense output
        compiler_params=pltpu.CompilerParams(
            dimension_semantics=("parallel",)),
    )(xi, p, b)

    # Flatten back to sample order; slice is elided when N is already aligned.
    return out.reshape(-1)[:n].reshape(n, 1)


def _reference(x, weight, bias):
    # Pure-VPU-style f32 reference: y = relu(x0*w00 + x1*w01 + b)
    return jnp.maximum(x[:, 0:1] * weight[0, 0] + x[:, 1:2] * weight[0, 1] + bias, 0.0)


if __name__ == "__main__":
    key = jax.random.PRNGKey(0)
    kx, kw, kb = jax.random.split(key, 3)

    # nn.Linear(2, 1): weight (1, 2), bias (1,), PyTorch default init range.
    bound = 1.0 / jnp.sqrt(2.0)
    weight = jax.random.uniform(kw, (1, 2), jnp.float32, -bound, bound)
    bias = jax.random.uniform(kb, (1,), jnp.float32, -bound, bound)

    # Primary small test (matches the module's expected tiny batch).
    x = jax.random.normal(kx, (8, 2), jnp.float32)
    out = simple_model_with_relu(x, weight, bias)
    jax.block_until_ready(out)
    assert out.shape == (8, 1)
    assert jnp.allclose(out, _reference(x, weight, bias), atol=1e-5), "mismatch (N=8)"

    # Extra coverage: multi-step grid (aligned) and ragged-tail path.
    for n_extra in (4096, 2500):
        xe = jax.random.normal(jax.random.PRNGKey(n_extra), (n_extra, 2), jnp.float32)
        oe = simple_model_with_relu(xe, weight, bias)
        jax.block_until_ready(oe)
        assert oe.shape == (n_extra, 1)
        assert jnp.allclose(oe, _reference(xe, weight, bias), atol=1e-5), \
            f"mismatch (N={n_extra})"

    print("KERNEL_OK")
</pallas_src>

<mosaic_0001>
module attributes {stable_mosaic.version = 11 : i64} {
  func.func @linear_relu_kernel(%arg0: i32, %arg1: memref<8x256xf32, #tpu.memory_space<vmem>>, %arg2: memref<256x128xf32, #tpu.memory_space<vmem>>, %arg3: memref<1xf32, #tpu.memory_space<smem>>, %arg4: memref<8x128xf32, #tpu.memory_space<vmem>>) attributes {dimension_semantics = [#tpu.dimension_semantics<parallel>], iteration_bounds = array<i64: 1>, scalar_prefetch = 0 : i64, scratch_operands = 0 : i64, tpu.core_type = #tpu.core_type<tc>, window_params = [{transform_indices = @transform_0, window_bounds = array<i64: 8, 256>}, {pipeline_mode = #tpu.pipeline_mode<synchronous>, transform_indices = @transform_1, window_bounds = array<i64: 256, 128>}, {transform_indices = @transform_2, window_bounds = array<i64: 1>}, {transform_indices = @transform_3, window_bounds = array<i64: 8, 128>}]} {
    %c0 = arith.constant 0 : index
    %c0_0 = arith.constant 0 : index
    %0 = vector.load %arg1[%c0, %c0_0] : memref<8x256xf32, #tpu.memory_space<vmem>>, vector<8x256xf32>
    %c0_1 = arith.constant 0 : index
    %c0_2 = arith.constant 0 : index
    %1 = vector.load %arg2[%c0_1, %c0_2] : memref<256x128xf32, #tpu.memory_space<vmem>>, vector<256x128xf32>
    %cst = arith.constant dense<0.000000e+00> : vector<8x128xf32>
    %2 = tpu.matmul %0, %1, %cst {dimension_numbers = #tpu.dot_dimension_numbers<[1], [0], [0], [1], [0, 0, 1, 1], [], []>, precision = #tpu.contract_precision<fp32>} : vector<8x256xf32>, vector<256x128xf32>, vector<8x128xf32> -> vector<8x128xf32>
    %c0_3 = arith.constant 0 : index
    %3 = memref.load %arg3[%c0_3] : memref<1xf32, #tpu.memory_space<smem>>
    %4 = vector.broadcast %3 : f32 to vector<8x128xf32>
    %5 = arith.addf %2, %4 : vector<8x128xf32>
    %cst_4 = arith.constant 0.000000e+00 : f32
    %6 = vector.broadcast %cst_4 : f32 to vector<8x128xf32>
    %7 = arith.maximumf %5, %6 : vector<8x128xf32>
    %c0_5 = arith.constant 0 : index
    %c0_6 = arith.constant 0 : index
    %8 = vector.load %arg4[%c0_5, %c0_6] : memref<8x128xf32, #tpu.memory_space<vmem>>, vector<8x128xf32>
    tpu.vector_store %arg4[%c0_5, %c0_6], %7 {strides = array<i32>} : memref<8x128xf32, #tpu.memory_space<vmem>>, vector<8x128xf32>,
    return
  }
  func.func @transform_0(%arg0: i32) -> (i32, i32) {
    %c0_i32 = arith.constant 0 : i32
    %c0_i32_0 = arith.constant 0 : i32
    return %arg0, %c0_i32 : i32, i32
  }
  func.func @transform_1(%arg0: i32) -> (i32, i32) {
    %c0_i32 = arith.constant 0 : i32
    %c0_i32_0 = arith.constant 0 : i32
    %c0_i32_1 = arith.constant 0 : i32
    return %c0_i32, %c0_i32_0 : i32, i32
  }
  func.func @transform_2(%arg0: i32) -> i32 {
    %c0_i32 = arith.constant 0 : i32
    %c0_i32_0 = arith.constant 0 : i32
    return %c0_i32 : i32
  }
  func.func @transform_3(%arg0: i32) -> (i32, i32) {
    %c0_i32 = arith.constant 0 : i32
    %c0_i32_0 = arith.constant 0 : i32
    return %arg0, %c0_i32 : i32, i32
  }
}

</mosaic_0001>

<bundles_post_ra>
// kernel: simple_model_with_relu.1
= control target key start
LH: loop header
LB: loop body
LE: loop exit
PB: predicated region body
PF: predicated region fallthrough
CT: control target
= control target key end

     0   :  { %s1847_s1 = inlined_call_operand.vmem [shape: f32[256,128], index: 1, kind: input, shape index: {}]   ;;  %s1848_s0 = inlined_call_operand.vmem [shape: f32[8,256], index: 0, kind: input, shape index: {}]   ;;  %s1849_s2 = inlined_call_operand.<no memory space> [shape: f32[1], index: 2, kind: input, shape index: {}]   ;;  %s1850_s3 = inlined_call_operand.vmem [shape: f32[8,128], index: 3, kind: output, shape index: {}]  }
   0x1   :  { %v33_v0 = vld [vmem:[%s1847_s1 + $0x80] sm:$0xff]  ;;  %v34_v1 = vld [vmem:[%s1847_s1 + $0x88] sm:$0xff]  ;;  %v35_v7 = vld [vmem:[%s1847_s1 + $0x90] sm:$0xff] }
   0x2   :  { %v17_v2 = vld [vmem:[%s1847_s1] sm:$0xff]  ;;  %v100_v3 = vand.u32 4294901760, %v33_v0  ;;  %v103_v4 = vand.u32 4294901760, %v34_v1  ;;  %v18_v5 = vld [vmem:[%s1847_s1 + $0x8] sm:$0xff]  ;;  %v36_v8 = vld [vmem:[%s1847_s1 + $0x98] sm:$0xff]  ;;  %v106_v10 = vand.u32 4294901760, %v35_v7 }
   0x3   :  { %v52_v6 = vand.u32 4294901760, %v17_v2  ;;  %v55_v9 = vand.u32 4294901760, %v18_v5  ;;  %v109_v11 = vand.u32 4294901760, %v36_v8  ;;  %v19_v12 = vld [vmem:[%s1847_s1 + $0x10] sm:$0xff]  ;;  %v20_v13 = vld [vmem:[%s1847_s1 + $0x18] sm:$0xff]  ;;  %v37_v18 = vld [vmem:[%s1847_s1 + $0xa0] sm:$0xff] }
   0x4   :  { %v1365_v14 = vpack.c.bf16 %v103_v4, %v100_v3  ;;  %v58_v16 = vand.u32 4294901760, %v19_v12  ;;  %v61_v17 = vand.u32 4294901760, %v20_v13  ;;  %v38_v19 = vld [vmem:[%s1847_s1 + $0xa8] sm:$0xff]  ;;  %v21_v23 = vld [vmem:[%s1847_s1 + $0x20] sm:$0xff]  ;;  %v1388_v25 = vsub.f32 %v35_v7, %v106_v10  ;;  %v39_v37 = vld [vmem:[%s1847_s1 + $0xb0] sm:$0xff] }
   0x5   :  { %v1367_v15 = vsub.f32 %v17_v2, %v52_v6  ;;  %v1375_v20 = vpack.c.bf16 %v55_v9, %v52_v6  ;;  %v1377_v21 = vsub.f32 %v18_v5, %v55_v9  ;;  %v1379_v22 = vpack.c.bf16 %v109_v11, %v106_v10  ;;  %v22_v24 = vld [vmem:[%s1847_s1 + $0x28] sm:$0xff]  ;;  %v40_v42 = vld [vmem:[%s1847_s1 + $0xb8] sm:$0xff]  ;;  %v23_v55 = vld [vmem:[%s1847_s1 + $0x30] sm:$0xff] }
   0x6   :  { %1130 = vmatprep.subr.bf16.mxu0 %v1365_v14  ;;  %v1390_v26 = vsub.f32 %v36_v8, %v109_v11  ;;  %v1392_v27 = vpack.c.bf16 %v61_v17, %v58_v16  ;;  %v1394_v28 = vsub.f32 %v19_v12, %v58_v16  ;;  %v112_v29 = vand.u32 4294901760, %v37_v18  ;;  %v24_v56 = vld [vmem:[%s1847_s1 + $0x38] sm:$0xff]  ;;  %v41_v5 = vld [vmem:[%s1847_s1 + $0xc0] sm:$0xff]  ;;  %v42_v6 = vld [vmem:[%s1847_s1 + $0xc8] sm:$0xff] }
   0x7   :  { %1132 = vmatpush3.bf16.msra.mxu0 %v1375_v20  ;;  %v115_v30 = vand.u32 4294901760, %v38_v19  ;;  %v1397_v31 = vsub.f32 %v33_v0, %v100_v3  ;;  %v1399_v32 = vsub.f32 %v34_v1, %v103_v4  ;;  %v64_v33 = vand.u32 4294901760, %v21_v23  ;;  %v25_v11 = vld [vmem:[%s1847_s1 + $0x40] sm:$0xff] }
   0x8   :  { %1134 = vmatprep.subr.bf16.mxu0 %v1379_v22  ;;  %v67_v34 = vand.u32 4294901760, %v22_v24  ;;  %v1867_v35 = vand.u32 4294901760, %v1367_v15  ;;  %v1866_v36 = vand.u32 4294901760, %v1377_v21  ;;  %v1407_v38 = vsub.f32 %v20_v13, %v61_v17 }
   0x9   :  { %v1409_v39 = vpack.c.bf16 %v115_v30, %v112_v29  ;;  %v1411_v40 = vsub.f32 %v37_v18, %v112_v29  ;;  %v1872_v41 = vand.u32 4294901760, %v1397_v31  ;;  %v1417_v43 = vsub.f32 %v38_v19, %v115_v30  ;;  %v26_v29 = vld [vmem:[%s1847_s1 + $0x48] sm:$0xff] }
   0xa   :  { %v1869_v44 = vand.u32 4294901760, %v1399_v32  ;;  %v1420_v45 = vpack.c.bf16 %v67_v34, %v64_v33  ;;  %v1422_v46 = vsub.f32 %v21_v23, %v64_v33  ;;  %v167_v48 = vsub.f32 %v1367_v15, %v1867_v35 }
   0xb   :  { %1136 = vmatpush3.bf16.msra.mxu0 %v1392_v27  ;;  %v279_v47 = vsub.f32 %v1397_v31, %v1872_v41  ;;  %v174_v49 = vsub.f32 %v1377_v21, %v1866_v36  ;;  %v118_v50 = vand.u32 4294901760, %v39_v37  ;;  %v121_v52 = vand.u32 4294901760, %v40_v42 }
   0xc   :  { %1138 = vmatprep.subr.bf16.mxu0 %v1409_v39  ;;  %v286_v51 = vsub.f32 %v1399_v32, %v1869_v44  ;;  %v1864_v53 = vand.u32 4294901760, %v1388_v25  ;;  %v1863_v54 = vand.u32 4294901760, %v1390_v26  ;;  %v1446_v58 = vsub.f32 %v22_v24, %v67_v34 }
   0xd   :  { %v280_v57 = vand.u32 4294901760, %v279_v47  ;;  %v168_v59 = vand.u32 4294901760, %v167_v48  ;;  %v175_v60 = vand.u32 4294901760, %v174_v49  ;;  %v1448_v62 = vpack.c.bf16 %v121_v52, %v118_v50 }
   0xe   :  { %v287_v61 = vand.u32 4294901760, %v286_v51  ;;  %v1450_v63 = vsub.f32 %v39_v37, %v118_v50  ;;  %v293_v0 = vsub.f32 %v1388_v25, %v1864_v53  ;;  %v300_v2 = vsub.f32 %v1390_v26, %v1863_v54 }
   0xf   :  { %1140 = vmatpush3.bf16.msra.mxu0 %v1420_v45  ;;  %v1163_v1 = vpack.c.bf16 %v175_v60, %v168_v59  ;;  %v70_v3 = vand.u32 4294901760, %v23_v55  ;;  %v73_v4 = vand.u32 4294901760, %v24_v56  ;;  %v1862_v9 = vand.u32 4294901760, %v1394_v28 }
  0x10   :  { %v1161_v7 = vpack.c.bf16 %v287_v61, %v280_v57  ;;  %1142 = vmatprep.subr.bf16.mxu0 %v1448_v62  ;;  %v294_v8 = vand.u32 4294901760, %v293_v0  ;;  %v1859_v10 = vand.u32 4294901760, %v1407_v38  ;;  %v1471_v12 = vsub.f32 %v40_v42, %v121_v52  ;;  %v44_v57 = vld [vmem:[%s1847_s1 + $0xd8] sm:$0xff] }
  0x11   :  { %v301_v13 = vand.u32 4294901760, %v300_v2  ;;  %v1473_v16 = vpack.c.bf16 %v73_v4, %v70_v3  ;;  %v1475_v17 = vsub.f32 %v23_v55, %v70_v3  ;;  %v181_v18 = vsub.f32 %v1394_v28, %v1862_v9 }
  0x12   :  { %1162 = vmatprep.subr.bf16.mxu1 %v1161_v7  ;;  %v188_v19 = vsub.f32 %v1407_v38, %v1859_v10  ;;  %v124_v23 = vand.u32 4294901760, %v41_v5  ;;  %v127_v24 = vand.u32 4294901760, %v42_v6  ;;  %v1857_v33 = vand.u32 4294901760, %v1411_v40 }
  0x13   :  { %1164 = vmatpush3.bf16.msra.mxu1 %v1163_v1  ;;  %v1165_v30 = vpack.c.bf16 %v301_v13, %v294_v8  ;;  %1144 = vmatpush3.bf16.msra.mxu0 %v1473_v16  ;;  %v1856_v34 = vand.u32 4294901760, %v1417_v43  ;;  %v76_v37 = vand.u32 4294901760, %v25_v11  ;;  %v1489_v42 = vsub.f32 %v24_v56, %v73_v4  ;;  %v43_v56 = vld [vmem:[%s1847_s1 + $0xd0] sm:$0xff] }
  0x14   :  { %v182_v47 = vand.u32 4294901760, %v181_v18  ;;  %v189_v48 = vand.u32 4294901760, %v188_v19  ;;  %v1491_v49 = vpack.c.bf16 %v127_v24, %v124_v23  ;;  %v1493_v50 = vsub.f32 %v41_v5, %v124_v23  ;;  %v27_v1 = vld [vmem:[%s1847_s1 + $0x50] sm:$0xff]  ;;  %v28_v18 = vld [vmem:[%s1847_s1 + $0x58] sm:$0xff] }
  0x15   :  { %1166 = vmatprep.subr.bf16.mxu1 %v1165_v30  ;;  %v307_v51 = vsub.f32 %v1411_v40, %v1857_v33  ;;  %v314_v52 = vsub.f32 %v1417_v43, %v1856_v34  ;;  %v79_v55 = vand.u32 4294901760, %v26_v29  ;;  %v1508_v60 = vsub.f32 %v42_v6, %v127_v24 }
  0x16   :  { %v1167_v59 = vpack.c.bf16 %v189_v48, %v182_v47  ;;  %1146 = vmatprep.subr.bf16.mxu0 %v1491_v49  ;;  %v1854_v61 = vand.u32 4294901760, %v1422_v46  ;;  %v1853_v0 = vand.u32 4294901760, %v1446_v58  ;;  %v1517_v5 = vsub.f32 %v25_v11, %v76_v37 }
  0x17   :  { %v308_v2 = vand.u32 4294901760, %v307_v51  ;;  %v315_v3 = vand.u32 4294901760, %v314_v52  ;;  %v1515_v4 = vpack.c.bf16 %v79_v55, %v76_v37  ;;  %v130_v8 = vand.u32 4294901760, %v43_v56 }
  0x18   :  { %1168 = vmatpush3.bf16.msra.mxu1 %v1167_v59  ;;  %v195_v6 = vsub.f32 %v1422_v46, %v1854_v61  ;;  %v202_v7 = vsub.f32 %v1446_v58, %v1853_v0  ;;  %v133_v13 = vand.u32 4294901760, %v44_v57  ;;  %v1852_v11 = vand.u32 4294901760, %v1450_v63 }
  0x19   :  { %v1169_v19 = vpack.c.bf16 %v315_v3, %v308_v2  ;;  %1148 = vmatpush3.bf16.msra.mxu0 %v1515_v4  ;;  %v1851_v23 = vand.u32 4294901760, %v1471_v12  ;;  %v82_v24 = vand.u32 4294901760, %v27_v1  ;;  %v1531_v30 = vsub.f32 %v26_v29, %v79_v55  ;;  %v45_v29 = vld [vmem:[%s1847_s1 + $0xe0] sm:$0xff]  ;;  %v46_v55 = vld [vmem:[%s1847_s1 + $0xe8] sm:$0xff] }
  0x1a   :  { %v196_v37 = vand.u32 4294901760, %v195_v6  ;;  %v203_v47 = vand.u32 4294901760, %v202_v7  ;;  %v1533_v48 = vpack.c.bf16 %v133_v13, %v130_v8  ;;  %v1535_v51 = vsub.f32 %v43_v56, %v130_v8  ;;  %v29_v8 = vld [vmem:[%s1847_s1 + $0x60] sm:$0xff] }
  0x1b   :  { %1170 = vmatprep.subr.bf16.mxu1 %v1169_v19  ;;  %v321_v52 = vsub.f32 %v1450_v63, %v1852_v11  ;;  %v328_v59 = vsub.f32 %v1471_v12, %v1851_v23  ;;  %v85_v2 = vand.u32 4294901760, %v28_v18  ;;  %v1550_v56 = vsub.f32 %v44_v57, %v133_v13 }
  0x1c   :  { %v1171_v3 = vpack.c.bf16 %v203_v47, %v196_v37  ;;  %1150 = vmatprep.subr.bf16.mxu0 %v1533_v48  ;;  %v1855_v6 = vand.u32 4294901760, %v1475_v17  ;;  %v1858_v7 = vand.u32 4294901760, %v1489_v42  ;;  %v1559_v0 = vsub.f32 %v27_v1, %v82_v24 }
  0x1d   :  { %v322_v19 = vand.u32 4294901760, %v321_v52  ;;  %v329_v23 = vand.u32 4294901760, %v328_v59  ;;  %v1557_v11 = vpack.c.bf16 %v85_v2, %v82_v24  ;;  %v136_v37 = vand.u32 4294901760, %v45_v29  ;;  %v30_v52 = vld [vmem:[%s1847_s1 + $0x68] sm:$0xff] }
  0x1e   :  { %1172 = vmatpush3.bf16.msra.mxu1 %v1171_v3  ;;  %v209_v57 = vsub.f32 %v1475_v17, %v1855_v6  ;;  %v216_v13 = vsub.f32 %v1489_v42, %v1858_v7  ;;  %v139_v47 = vand.u32 4294901760, %v46_v55  ;;  %v1861_v1 = vand.u32 4294901760, %v1493_v50 }
  0x1f   :  { %v1173_v59 = vpack.c.bf16 %v329_v23, %v322_v19  ;;  %1152 = vmatpush3.bf16.msra.mxu0 %v1557_v11  ;;  %v1860_v24 = vand.u32 4294901760, %v1508_v60  ;;  %v88_v3 = vand.u32 4294901760, %v29_v8  ;;  %v1573_v61 = vsub.f32 %v28_v18, %v85_v2  ;;  %v47_v18 = vld [vmem:[%s1847_s1 + $0xf0] sm:$0xff]  ;;  %v48_v2 = vld [vmem:[%s1847_s1 + $0xf8] sm:$0xff] }
  0x20   :  { %v210_v6 = vand.u32 4294901760, %v209_v57  ;;  %v217_v34 = vand.u32 4294901760, %v216_v13  ;;  %v1575_v33 = vpack.c.bf16 %v139_v47, %v136_v37  ;;  %v1577_v7 = vsub.f32 %v45_v29, %v136_v37 }
  0x21   :  { %1174 = vmatprep.subr.bf16.mxu1 %v1173_v59  ;;  %v335_v23 = vsub.f32 %v1493_v50, %v1861_v1  ;;  %v342_v19 = vsub.f32 %v1508_v60, %v1860_v24  ;;  %v91_v10 = vand.u32 4294901760, %v30_v52  ;;  %v1592_v29 = vsub.f32 %v46_v55, %v139_v47  ;;  %v31_v59 = vld [vmem:[%s1847_s1 + $0x70] sm:$0xff] }
  0x22   :  { %v1175_v57 = vpack.c.bf16 %v217_v34, %v210_v6  ;;  %1154 = vmatprep.subr.bf16.mxu0 %v1575_v33  ;;  %v1865_v13 = vand.u32 4294901760, %v1517_v5  ;;  %v1868_v37 = vand.u32 4294901760, %v1531_v30  ;;  %v1601_v54 = vsub.f32 %v29_v8, %v88_v3 }
  0x23   :  { %v336_v24 = vand.u32 4294901760, %v335_v23  ;;  %v343_v1 = vand.u32 4294901760, %v342_v19  ;;  %v1599_v9 = vpack.c.bf16 %v91_v10, %v88_v3  ;;  %v142_v6 = vand.u32 4294901760, %v47_v18  ;;  %v32_v23 = vld [vmem:[%s1847_s1 + $0x78] sm:$0xff] }
  0x24   :  { %1176 = vmatpush3.bf16.msra.mxu1 %v1175_v57  ;;  %v223_v34 = vsub.f32 %v1517_v5, %v1865_v13  ;;  %v230_v55 = vsub.f32 %v1531_v30, %v1868_v37  ;;  %v145_v47 = vand.u32 4294901760, %v48_v2  ;;  %v1871_v8 = vand.u32 4294901760, %v1535_v51 }
  0x25   :  { %1895 = vst [vmem:[#allocation3_spill] sm:$0xff] %v1599_v9  ;;  %v1177_v19 = vpack.c.bf16 %v343_v1, %v336_v24  ;;  %1156 = vmatpush3.bf16.msra.mxu0 %v1599_v9  ;;  %v1870_v3 = vand.u32 4294901760, %v1550_v56  ;;  %v94_v57 = vand.u32 4294901760, %v31_v59  ;;  %v1615_v53 = vsub.f32 %v30_v52, %v91_v10  ;;  %v15_v10 = vld [vmem:[%s1848_s0] sm:$0xff]  ;;  %v16_v52 = vld [vmem:[%s1848_s0 + $0x8] sm:$0xff] }
  0x26   :  { %v224_v13 = vand.u32 4294901760, %v223_v34  ;;  %v231_v36 = vand.u32 4294901760, %v230_v55  ;;  %v1617_v35 = vpack.c.bf16 %v145_v47, %v142_v6  ;;  %v1619_v37 = vsub.f32 %v47_v18, %v142_v6 }
  0x27   :  { %1178 = vmatprep.subr.bf16.mxu1 %v1177_v19  ;;  %v349_v1 = vsub.f32 %v1535_v51, %v1871_v8  ;;  %v356_v24 = vsub.f32 %v1550_v56, %v1870_v3  ;;  %v97_v44 = vand.u32 4294901760, %v32_v23  ;;  %v1634_v18 = vsub.f32 %v48_v2, %v145_v47 }
  0x28   :  { %1896 = vst [vmem:[#allocation4_spill] sm:$0xff] %v1617_v35  ;;  %v1179_v34 = vpack.c.bf16 %v231_v36, %v224_v13  ;;  %1158 = vmatprep.subr.bf16.mxu0 %v1617_v35  ;;  %v1875_v55 = vand.u32 4294901760, %v1559_v0  ;;  %v1876_v6 = vand.u32 4294901760, %v1573_v61  ;;  %v1640_v41 = vsub.f32 %v31_v59, %v94_v57 }
  0x29   :  { %v350_v19 = vand.u32 4294901760, %v349_v1  ;;  %v357_v3 = vand.u32 4294901760, %v356_v24  ;;  %v1638_v8 = vpack.c.bf16 %v97_v44, %v94_v57  ;;  %v1648_v2 = vand.u32 4294901760, %v16_v52 }
  0x2a   :  { %1180 = vmatpush3.bf16.msra.mxu1 %v1179_v34  ;;  %v237_v9 = vsub.f32 %v1559_v0, %v1875_v55  ;;  %v244_v36 = vsub.f32 %v1573_v61, %v1876_v6  ;;  %v1650_v13 = vand.u32 4294901760, %v15_v10  ;;  %v1883_v1 = vand.u32 4294901760, %v1577_v7 }
  0x2b   :  { %1897 = vst [vmem:[#allocation5_spill] sm:$0xff] %v1638_v8  ;;  %1898 = vst [vmem:[#allocation6_spill] sm:$0xff] %v1648_v2  ;;  %v1181_v47 = vpack.c.bf16 %v357_v3, %v350_v19  ;;  %1160 = vmatpush3.bf16.msra.mxu0 %v1638_v8  ;;  %v1885_v59 = vand.u32 4294901760, %v1592_v29  ;;  %v1193_v57 = vpack.c.bf16 %v1399_v32, %v1397_v31  ;;  %388 = vmatprep.mubr.f32.mxu1 %v1648_v2 }
  0x2c   :  { %v238_v24 = vand.u32 4294901760, %v237_v9  ;;  %v245_v34 = vand.u32 4294901760, %v244_v36  ;;  %v1658_v55 = vsub.f32 %v16_v52, %v1648_v2  ;;  %v1661_v6 = vsub.f32 %v15_v10, %v1650_v13 }
  0x2d   :  { %1182 = vmatprep.subr.bf16.mxu1 %v1181_v47  ;;  %v363_v3 = vsub.f32 %v1577_v7, %v1883_v1  ;;  %v370_v19 = vsub.f32 %v1592_v29, %v1885_v59  ;;  %1194 = vmatprep.subr.bf16.mxu0 %v1193_v57  ;;  %v1884_v9 = vand.u32 4294901760, %v1601_v54  ;;  %v1886_v52 = vand.u32 4294901760, %v1615_v53 }
  0x2e   :  { %1899 = vst [vmem:[#allocation7_spill] sm:$0xff] %v1661_v6  ;;  %v1672_v36 = vsub.f32 %v32_v23, %v97_v44  ;;  %v1183_v10 = vpack.c.bf16 %v245_v34, %v238_v24  ;;  %v1887_v8 = vand.u32 4294901760, %v1658_v55  ;;  %v1888_v47 = vand.u32 4294901760, %v1661_v6 }
  0x2f   :  { %v364_v35 = vand.u32 4294901760, %v363_v3  ;;  %v371_v2 = vand.u32 4294901760, %v370_v19  ;;  %v251_v1 = vsub.f32 %v1601_v54, %v1884_v9  ;;  %v258_v57 = vsub.f32 %v1615_v53, %v1886_v52 }
  0x30   :  { %1184 = vmatpush3.bf16.msra.mxu1 %v1183_v10  ;;  %v150_v44 = vsub.f32 %v1658_v55, %v1887_v8  ;;  %v156_v23 = vsub.f32 %v1661_v6, %v1888_v47  ;;  %v1894_v24 = vand.u32 4294901760, %v1619_v37  ;;  %v1891_v34 = vand.u32 4294901760, %v1634_v18 }
  0x31   :  { %v1185_v3 = vpack.c.bf16 %v371_v2, %v364_v35  ;;  %v252_v19 = vand.u32 4294901760, %v251_v1  ;;  %v259_v9 = vand.u32 4294901760, %v258_v57  ;;  %v1195_v59 = vpack.c.bf16 %v1377_v21, %v1367_v15 }
  0x32   :  { %v151_v52 = vand.u32 4294901760, %v150_v44  ;;  %v157_v10 = vand.u32 4294901760, %v156_v23  ;;  %v377_v8 = vsub.f32 %v1619_v37, %v1894_v24  ;;  %v384_v47 = vsub.f32 %v1634_v18, %v1891_v34 }
  0x33   :  { %1186 = vmatprep.subr.bf16.mxu1 %v1185_v3  ;;  %v1187_v6 = vpack.c.bf16 %v259_v9, %v252_v19  ;;  %v1197_v35 = vpack.c.bf16 %v1390_v26, %v1388_v25  ;;  %v1893_v2 = vand.u32 4294901760, %v1640_v41  ;;  %v1892_v1 = vand.u32 4294901760, %v1672_v36 }
  0x34   :  { %152 = vmatprep.mubr.f32.mxu0 %v151_v52  ;;  %v378_v57 = vand.u32 4294901760, %v377_v8  ;;  %v385_v44 = vand.u32 4294901760, %v384_v47  ;;  %v1199_v19 = vpack.c.bf16 %v1407_v38, %v1394_v28  ;;  %v1201_v8 = vpack.c.bf16 %v1417_v43, %v1411_v40 }
  0x35   :  { %158 = vmatmul.mubr.f32.vlgmr.msra.gmra.mrb[0].mxu0 %v157_v10  ;;  %1188 = vmatpush3.bf16.msra.mxu1 %v1187_v6  ;;  %v265_v23 = vsub.f32 %v1640_v41, %v1893_v2  ;;  %v272_v9 = vsub.f32 %v1672_v36, %v1892_v1  ;;  %v1203_v6 = vpack.c.bf16 %v1446_v58, %v1422_v46  ;;  %v1900_v10 = vand.u32 4294901760, %v1397_v31 }
  0x36   :  { %1196 = vmatpush3.bf16.msra.mxu0 %v1195_v59  ;;  %v1189_v3 = vpack.c.bf16 %v385_v44, %v378_v57  ;;  %525 = vmatprep.mubr.f32.mxu0 %v1658_v55  ;;  %v1205_v47 = vpack.c.bf16 %v1471_v12, %v1450_v63  ;;  %v1901_v57 = vand.u32 4294901760, %v1399_v32  ;;  %v1902_v44 = vand.u32 4294901760, %v1367_v15 }
  0x37   :  { %1198 = vmatprep.subr.bf16.mxu0 %v1197_v35  ;;  %v266_v34 = vand.u32 4294901760, %v265_v23  ;;  %v273_v52 = vand.u32 4294901760, %v272_v9  ;;  %v1903_v23 = vand.u32 4294901760, %v1377_v21  ;;  %v1904_v1 = vand.u32 4294901760, %v1388_v25 }
  0x38   :  { %1190 = vmatprep.subr.bf16.mxu1 %v1189_v3  ;;  %v1257_v35 = vpack.c.bf16 %v1901_v57, %v1900_v10  ;;  %v1905_v3 = vand.u32 4294901760, %v1390_v26  ;;  %v1906_v24 = vand.u32 4294901760, %v1394_v28  ;;  %v1908_v31 = vand.u32 4294901760, %v1411_v40 }
  0x39   :  { %v1191_v59 = vpack.c.bf16 %v273_v52, %v266_v34  ;;  %v1259_v9 = vpack.c.bf16 %v1903_v23, %v1902_v44  ;;  %v1907_v34 = vand.u32 4294901760, %v1407_v38  ;;  %v1909_v32 = vand.u32 4294901760, %v1417_v43  ;;  %v1924_v23 = vld [vmem:[#allocation4_spill] sm:$0xff] }
  0x3a   :  { %v1261_v2 = vpack.c.bf16 %v1905_v3, %v1904_v1  ;;  %1200 = vmatpush3.bf16.msra.mxu0 %v1199_v19  ;;  %v1910_v15 = vand.u32 4294901760, %v1422_v46  ;;  %v1911_v21 = vand.u32 4294901760, %v1446_v58  ;;  %v1912_v25 = vand.u32 4294901760, %v1450_v63  ;;  %v1925_v3 = vld [vmem:[#allocation5_spill] sm:$0xff] }
  0x3b   :  { %v1263_v52 = vpack.c.bf16 %v1907_v34, %v1906_v24  ;;  %v1265_v10 = vpack.c.bf16 %v1909_v32, %v1908_v31  ;;  %v1913_v26 = vand.u32 4294901760, %v1471_v12  ;;  %1192 = vmatpush3.bf16.msra.mxu1 %v1191_v59  ;;  %1202 = vmatprep.subr.bf16.mxu0 %v1201_v8  ;;  %v1914_v28 = vand.u32 4294901760, %v1475_v17 }
  0x3c   :  { %v1267_v57 = vpack.c.bf16 %v1911_v21, %v1910_v15  ;;  %v1915_v38 = vand.u32 4294901760, %v1489_v42  ;;  %v1916_v43 = vand.u32 4294901760, %v1493_v50  ;;  %v1917_v24 = vand.u32 4294901760, %v1508_v60  ;;  %1226 = vmatprep.subr.bf16.mxu1 %v1365_v14 }
  0x3d   :  { %v1269_v1 = vpack.c.bf16 %v1913_v26, %v1912_v25  ;;  %v1918_v58 = vand.u32 4294901760, %v1517_v5  ;;  %v1919_v19 = vand.u32 4294901760, %v1531_v30  ;;  %v1207_v12 = vpack.c.bf16 %v1489_v42, %v1475_v17 }
  0x3e   :  { %v1271_v40 = vpack.c.bf16 %v1915_v38, %v1914_v28  ;;  %v1273_v46 = vpack.c.bf16 %v1917_v24, %v1916_v43  ;;  %390 = vmatmul.mubr.f32.vlgmr.msra.gmra.mrb[0].mxu1 %v1650_v13  ;;  %1204 = vmatpush3.bf16.msra.mxu0 %v1203_v6  ;;  %v1209_v8 = vpack.c.bf16 %v1508_v60, %v1493_v50  ;;  %v1920_v59 = vand.u32 4294901760, %v1658_v55  ;;  %v1921_v55 = vld [vmem:[#allocation7_spill] sm:$0xff]  ;;  %v1922_v6 = vld [vmem:[#allocation6_spill] sm:$0xff] }
  0x3f   :  { %v1275_v63 = vpack.c.bf16 %v1919_v19, %v1918_v58  ;;  %1228 = vmatpush3.bf16.msra.mxu1 %v1375_v20  ;;  %1206 = vmatprep.subr.bf16.mxu0 %v1205_v47  ;;  %v1211_v44 = vpack.c.bf16 %v1531_v30, %v1517_v5  ;;  %v1213_v17 = vpack.c.bf16 %v1550_v56, %v1535_v51  ;;  %v1923_v47 = vld [vmem:[#allocation3_spill] sm:$0xff]  ;;  %v1929_v34 = vand.u32 4294901760, %v1559_v0 }
  0x40   :  { %1230 = vmatprep.subr.bf16.mxu1 %v1379_v22  ;;  %632 = vmatprep.mubr.f32.mxu1 %v1920_v59  ;;  %v1215_v42 = vpack.c.bf16 %v1573_v61, %v1559_v0  ;;  %v1217_v50 = vpack.c.bf16 %v1592_v29, %v1577_v7  ;;  %v1219_v60 = vpack.c.bf16 %v1615_v53, %v1601_v54 }
  0x41   :  { %v1221_v5 = vpack.c.bf16 %v1634_v18, %v1619_v37  ;;  %v1223_v30 = vpack.c.bf16 %v1672_v36, %v1640_v41 }
  0x42   :  { %1208 = vmatpush3.bf16.msra.mxu0 %v1207_v12 }
  0x43   :  { %1232 = vmatpush3.bf16.msra.mxu1 %v1392_v27  ;;  %1210 = vmatprep.subr.bf16.mxu0 %v1209_v8 }
  0x44   :  { %1234 = vmatprep.subr.bf16.mxu1 %v1409_v39 }
  0x46   :  { %1212 = vmatpush3.bf16.msra.mxu0 %v1211_v44 }
  0x47   :  { %1236 = vmatpush3.bf16.msra.mxu1 %v1420_v45  ;;  %1214 = vmatprep.subr.bf16.mxu0 %v1213_v17 }
  0x48   :  { %1238 = vmatprep.subr.bf16.mxu1 %v1448_v62 }
  0x4a   :  { %1216 = vmatpush3.bf16.msra.mxu0 %v1215_v42 }
  0x4b   :  { %1240 = vmatpush3.bf16.msra.mxu1 %v1473_v16  ;;  %1218 = vmatprep.subr.bf16.mxu0 %v1217_v50 }
  0x4c   :  { %1242 = vmatprep.subr.bf16.mxu1 %v1491_v49 }
  0x4e   :  { %1220 = vmatpush3.bf16.msra.mxu0 %v1219_v60 }
  0x4f   :  { %1244 = vmatpush3.bf16.msra.mxu1 %v1515_v4  ;;  %1222 = vmatprep.subr.bf16.mxu0 %v1221_v5 }
  0x50   :  { %1246 = vmatprep.subr.bf16.mxu1 %v1533_v48 }
  0x52   :  { %1224 = vmatpush3.bf16.msra.mxu0 %v1223_v30 }
  0x53   :  { %1248 = vmatpush3.bf16.msra.mxu1 %v1557_v11  ;;  %1258 = vmatprep.subr.bf16.mxu0 %v1257_v35  ;;  %v1926_v35 = vand.u32 4294901760, %v1921_v55 }
  0x54   :  { %1250 = vmatprep.subr.bf16.mxu1 %v1575_v33 }
  0x55   :  { %528 = vmatmul.mubr.f32.vlgmr.msra.gmra.mrb[2].mxu0 %v1921_v55 }
  0x56   :  { %1260 = vmatpush3.bf16.msra.mxu0 %v1259_v9  ;;  %802 = vmatprep.mubr.f32.mxu0 %v1922_v6  ;;  %v1928_v9 = vand.u32 4294901760, %v1550_v56 }
  0x57   :  { %1252 = vmatpush3.bf16.msra.mxu1 %v1923_v47  ;;  %1262 = vmatprep.subr.bf16.mxu0 %v1261_v2  ;;  %v1927_v2 = vand.u32 4294901760, %v1535_v51  ;;  %v1933_v51 = vand.u32 4294901760, %v1601_v54 }
  0x58   :  { %1254 = vmatprep.subr.bf16.mxu1 %v1924_v23 }
  0x5a   :  { %1264 = vmatpush3.bf16.msra.mxu0 %v1263_v52 }
  0x5b   :  { %1256 = vmatpush3.bf16.msra.mxu1 %v1925_v3  ;;  %1266 = vmatprep.subr.bf16.mxu0 %v1265_v10 }
  0x5c   :  { %1290 = vmatprep.subr.bf16.mxu1 %v1365_v14  ;;  %v1277_v14 = vpack.c.bf16 %v1928_v9, %v1927_v2 }
  0x5e   :  { %636 = vmatmul.mubr.f32.vlgmr.msra.gmra.mrb[2].mxu1 %v1926_v35  ;;  %1268 = vmatpush3.bf16.msra.mxu0 %v1267_v57 }
  0x5f   :  { %1292 = vmatpush3.bf16.msra.mxu1 %v1375_v20  ;;  %1270 = vmatprep.subr.bf16.mxu0 %v1269_v1  ;;  %v1930_v20 = vand.u32 4294901760, %v1573_v61  ;;  %v1935_v61 = vand.u32 4294901760, %v1619_v37 }
  0x60   :  { %1294 = vmatprep.subr.bf16.mxu1 %v1379_v22  ;;  %906 = vmatprep.mubr.f32.mxu1 %v1922_v6  ;;  %v1931_v22 = vand.u32 4294901760, %v1577_v7  ;;  %v1937_v7 = vand.u32 4294901760, %v1640_v41 }
  0x61   :  { %v1279_v52 = vpack.c.bf16 %v1930_v20, %v1929_v34 }
  0x62   :  { %1272 = vmatpush3.bf16.msra.mxu0 %v1271_v40 }
  0x63   :  { %1296 = vmatpush3.bf16.msra.mxu1 %v1392_v27  ;;  %1274 = vmatprep.subr.bf16.mxu0 %v1273_v46  ;;  %v1932_v27 = vand.u32 4294901760, %v1592_v29 }
  0x64   :  { %1298 = vmatprep.subr.bf16.mxu1 %v1409_v39  ;;  %v1934_v39 = vand.u32 4294901760, %v1615_v53 }
  0x65   :  { %v1281_v31 = vpack.c.bf16 %v1932_v27, %v1931_v22 }
  0x66   :  { %1276 = vmatpush3.bf16.msra.mxu0 %v1275_v63  ;;  %v1283_v56 = vpack.c.bf16 %v1934_v39, %v1933_v51 }
  0x67   :  { %1300 = vmatpush3.bf16.msra.mxu1 %v1420_v45  ;;  %1278 = vmatprep.subr.bf16.mxu0 %v1277_v14  ;;  %v1936_v45 = vand.u32 4294901760, %v1634_v18 }
  0x68   :  { %1302 = vmatprep.subr.bf16.mxu1 %v1448_v62  ;;  %v1938_v62 = vand.u32 4294901760, %v1672_v36 }
  0x69   :  { %v1285_v0 = vpack.c.bf16 %v1936_v45, %v1935_v61 }
  0x6a   :  { %1280 = vmatpush3.bf16.msra.mxu0 %v1279_v52  ;;  %v1287_v29 = vpack.c.bf16 %v1938_v62, %v1937_v7 }
  0x6b   :  { %1304 = vmatpush3.bf16.msra.mxu1 %v1473_v16  ;;  %1282 = vmatprep.subr.bf16.mxu0 %v1281_v31  ;;  %v50_v16 = vstv %s1849_s2 }
  0x6c   :  { %1306 = vmatprep.subr.bf16.mxu1 %v1491_v49 }
  0x6e   :  { %1284 = vmatpush3.bf16.msra.mxu0 %v1283_v56 }
  0x6f   :  { %1308 = vmatpush3.bf16.msra.mxu1 %v1515_v4  ;;  %1286 = vmatprep.subr.bf16.mxu0 %v1285_v0 }
  0x70   :  { %1310 = vmatprep.subr.bf16.mxu1 %v1533_v48 }
  0x72   :  { %1288 = vmatpush3.bf16.msra.mxu0 %v1287_v29 }
  0x73   :  { %1312 = vmatpush3.bf16.msra.mxu1 %v1557_v11 }
  0x74   :  { %1314 = vmatprep.subr.bf16.mxu1 %v1575_v33 }
  0x75   :  { %804 = vmatmul.mubr.f32.vlgmr.msra.gmra.mrb[4].mxu0 %v1650_v13 }
  0x77   :  { %1316 = vmatpush3.bf16.msra.mxu1 %v1923_v47 }
  0x78   :  { %1318 = vmatprep.subr.bf16.mxu1 %v1924_v23 }
  0x7b   :  { %1320 = vmatpush3.bf16.msra.mxu1 %v1925_v3 }
  0x7e   :  { %908 = vmatmul.mubr.f32.vlgmr.msra.gmra.mrb[4].mxu1 %v1650_v13 }
 0x108   :  { %v951_v41 = vpop.f32.mrb[0].mxu0 }
 0x109   :  { %v952_v53 = vpop.f32.mrb[1].mxu0 }
 0x10a   :  { %v953_v54 = vadd.f32 %v952_v53, %v951_v41 }
 0x10c   :  { %v160_v49 = vadd.f32 %v953_v54, %v50_v16 }
 0x111   :  { %v986_v4 = vpop.f32.mrb[0].mxu1 }
 0x112   :  { %v987_v33 = vpop.f32.mrb[1].mxu1 }
 0x113   :  { %v988_v11 = vadd.f32 %v987_v33, %v986_v4 }
 0x115   :  { %v392_v48 = vadd.f32 %v988_v11, %v160_v49 }
 0x128   :  { %v1021_v37 = vpop.f32.mrb[2].mxu0 }
 0x129   :  { %v1022_v18 = vpop.f32.mrb[3].mxu0 }
 0x12a   :  { %v1023_v36 = vadd.f32 %v1022_v18, %v1021_v37 }
 0x12c   :  { %v530_v32 = vadd.f32 %v1023_v36, %v392_v48 }
 0x131   :  { %v1056_v10 = vpop.f32.mrb[2].mxu1 }
 0x132   :  { %v1057_v15 = vpop.f32.mrb[3].mxu1 }
 0x133   :  { %v1058_v21 = vadd.f32 %v1057_v15, %v1056_v10 }
 0x135   :  { %v638_v13 = vadd.f32 %v1058_v21, %v530_v32 }
 0x148   :  { %v1091_v57 = vpop.f32.mrb[4].mxu0 }
 0x149   :  { %v1092_v25 = vpop.f32.mrb[5].mxu0 }
 0x14a   :  { %v1093_v26 = vadd.f32 %v1092_v25, %v1091_v57 }
 0x14c   :  { %v806_v1 = vadd.f32 %v1093_v26, %v638_v13 }
 0x151   :  { %v1126_v28 = vpop.f32.mrb[4].mxu1 }
 0x152   :  { %v1127_v38 = vpop.f32.mrb[5].mxu1 }
 0x153   :  { %v1128_v40 = vadd.f32 %v1127_v38, %v1126_v28 }
 0x155   :  { %v910_v43 = vadd.f32 %v1128_v40, %v806_v1 }
 0x157   :  { %v913_v24 = vmax.f32 %v910_v43, 0.0 }
 0x159   :  { %914 = vst [vmem:[%s1850_s3] sm:$0xff] %v913_v24 }

</bundles_post_ra>
